<compile_context>
chip_gen: v7x
topology: tpu7x:2x2x1
jax: 0.10.0
libtpu: 0.0.40
codegen_flags: <defaults>
</compile_context>

<pallas_src>
import math

import jax
import jax.numpy as jnp
from jax.experimental import pallas as pl
from jax.experimental.pallas import tpu as pltpu


def _round_up(x, m):
    return (x + m - 1) // m * m


def _qfunc_kernel(x_ref, w1_ref, b1_ref, w2_ref, b2_ref, w3_ref, b3_ref, o_ref):
    # Layer 1: single K=D matmul (bf16 operands, f32 MXU accumulation),
    # then bias + ReLU in f32 on the VPU.
    h1 = jnp.dot(x_ref[...], w1_ref[...], preferred_element_type=jnp.float32)
    h1 = jnp.maximum(h1 + b1_ref[...], 0.0)

    # Layer 2: Linear + ReLU (bf16 MXU path, f32 accumulation, f32 epilogue).
    h2 = jnp.dot(h1.astype(w2_ref.dtype), w2_ref[...],
                 preferred_element_type=jnp.float32)
    h2 = jnp.maximum(h2 + b2_ref[...], 0.0)

    # Layer 3 (H2 -> 1): VPU multiply + XLU lane reduction instead of an N=1
    # MXU matmul (which would waste almost the whole systolic array).
    q = jnp.sum(h2 * w3_ref[...], axis=-1, keepdims=True) + b3_ref[0, 0]
    o_ref[...] = q.astype(o_ref.dtype)


def mlp_q_function(obs, act, params, *, compute_dtype=jnp.bfloat16):
    """Pallas implementation of MLPQFunction.forward for tuple observations.

    obs: tuple of arrays, each (B, ...) — flattened to (B, d_i) here
    act: (B, act_dim)
    params: dict with w1,b1,w2,b2,w3,b3; weights stored (in_features, out_features)
    returns: (B,) float32 q-values

    Note: layers 1-2 use bf16 operands on the MXU (f32 accumulation), so results
    differ from a pure-f32 PyTorch forward at ~1e-3 relative level.
    """
    parts = [jnp.reshape(o, (o.shape[0], -1)) for o in obs]
    parts.append(jnp.reshape(act, (act.shape[0], -1)))
    B = parts[0].shape[0]

    w1, b1 = params["w1"], params["b1"]
    w2, b2 = params["w2"], params["b2"]
    w3, b3 = params["w3"], params["b3"]
    D = w1.shape[0]
    H1, H2 = w1.shape[1], w2.shape[1]

    # Single wrapper-side concat; XLA fuses it with the bf16 cast and batch pad.
    x = jnp.concatenate(parts, axis=-1).astype(compute_dtype)
    assert x.shape[-1] == D, (x.shape, D)

    # Batch tiling: up to 1024 rows per grid step (double-buffered x tile);
    # weights stay VMEM-resident across steps via pinned (0,0) BlockSpecs.
    tb_max = 1024
    b_min = _round_up(B, 8)
    tb = b_min if b_min <= tb_max else tb_max
    b_pad = _round_up(B, tb)
    if b_pad != B:
        x = jnp.pad(x, ((0, b_pad - B), (0, 0)))

    grid = (b_pad // tb,)

    w1_c = w1.astype(compute_dtype)
    w2_c = w2.astype(compute_dtype)
    w3_row = jnp.reshape(w3, (1, H2)).astype(jnp.float32)      # f32 VPU path
    b1_r = jnp.reshape(b1, (1, H1)).astype(jnp.float32)
    b2_r = jnp.reshape(b2, (1, H2)).astype(jnp.float32)
    b3_s = jnp.reshape(b3, (1, 1)).astype(jnp.float32)          # SMEM scalar

    in_specs = [
        pl.BlockSpec((tb, D), lambda i: (i, 0)),                 # x (streamed)
        pl.BlockSpec((D, H1), lambda i: (0, 0)),                 # w1 (resident)
        pl.BlockSpec((1, H1), lambda i: (0, 0)),                 # b1
        pl.BlockSpec((H1, H2), lambda i: (0, 0)),                # w2 (resident)
        pl.BlockSpec((1, H2), lambda i: (0, 0)),                 # b2
        pl.BlockSpec((1, H2), lambda i: (0, 0)),                 # w3 row
        pl.BlockSpec(memory_space=pltpu.MemorySpace.SMEM),       # b3 scalar
    ]
    out_spec = pl.BlockSpec((tb, 1), lambda i: (i, 0))

    itemsize = jnp.dtype(compute_dtype).itemsize
    bytes_accessed = (
        b_pad * D * itemsize                        # streamed input
        + (D * H1 + H1 * H2) * itemsize             # resident weights
        + (H1 + H2 + H2 + 1) * 4                    # biases + w3 row (f32)
        + b_pad * 4                                 # output
    )
    cost = pl.CostEstimate(
        flops=2 * b_pad * (D * H1 + H1 * H2 + H2),
        transcendentals=0,
        bytes_accessed=int(bytes_accessed),
    )

    # TODO(synk): on v7x, pltpu.CORE_PARALLEL (or an explicit 2-wide leading grid
    # axis) may be needed to guarantee the batch axis is sharded across both
    # TensorCores; kept as "parallel" here for portability across v5e/v6e/v7x.
    q_pad = pl.pallas_call(
        _qfunc_kernel,
        out_shape=jax.ShapeDtypeStruct((b_pad, 1), jnp.float32),
        grid=grid,
        in_specs=in_specs,
        out_specs=out_spec,
        compiler_params=pltpu.CompilerParams(
            dimension_semantics=("parallel",),
            vmem_limit_bytes=32 * 1024 * 1024,       # safe on v5e/v6e/v7x; usage is a few MiB
        ),
        cost_estimate=cost,
    )(x, w1_c, b1_r, w2_c, b2_r, w3_row, b3_s)

    # torch.squeeze(q, -1)
    return jnp.squeeze(q_pad[:B], axis=-1)


def init_params(key, in_dim, hidden_sizes=(256, 256)):
    """Deterministic init mimicking nn.Linear default (U(-1/sqrt(fan_in), +))."""
    sizes = [in_dim] + list(hidden_sizes) + [1]
    params = {}
    for i in range(len(sizes) - 1):
        fan_in, fan_out = sizes[i], sizes[i + 1]
        key, kw, kb = jax.random.split(key, 3)
        bound = 1.0 / math.sqrt(fan_in)
        params[f"w{i + 1}"] = jax.random.uniform(
            kw, (fan_in, fan_out), jnp.float32, minval=-bound, maxval=bound
        )
        params[f"b{i + 1}"] = jax.random.uniform(
            kb, (1, fan_out), jnp.float32, minval=-bound, maxval=bound
        )
    return params


if __name__ == "__main__":
    key = jax.random.PRNGKey(0)
    k_obs1, k_obs2, k_act, k_params = jax.random.split(key, 4)

    # Small synthetic shapes: tuple observation space with two components
    # (feature dims 12 and 16), a 4-dim action space, batch = 8.
    B = 8
    obs1 = jax.random.normal(k_obs1, (B, 12), jnp.float32)
    obs2 = jax.random.normal(k_obs2, (B, 16), jnp.float32)
    act_in = jax.random.normal(k_act, (B, 4), jnp.float32)

    in_dim = 12 + 16 + 4
    hidden_sizes = (32, 32)  # small hidden sizes for the synthetic test
    params = init_params(k_params, in_dim, hidden_sizes)

    q_fn = jax.jit(lambda o, a: mlp_q_function(o, a, params))
    q = jax.block_until_ready(q_fn((obs1, obs2), act_in))
    assert q.shape == (B,), q.shape

    # Pure-JAX reference at matching precision (bf16 matmuls, f32 accumulation,
    # f32 elementwise final layer).
    cd = jnp.bfloat16
    x = jnp.concatenate([obs1, obs2, act_in], axis=-1)
    h = jnp.dot(x.astype(cd), params["w1"].astype(cd),
                preferred_element_type=jnp.float32) + params["b1"]
    h = jnp.maximum(h, 0.0)
    h = jnp.dot(h.astype(cd), params["w2"].astype(cd),
                preferred_element_type=jnp.float32) + params["b2"]
    h = jnp.maximum(h, 0.0)
    q_ref = jnp.sum(h * jnp.reshape(params["w3"], (1, -1)), axis=-1) + params["b3"][0, 0]

    assert jnp.allclose(q, q_ref, atol=2e-3, rtol=2e-3), (q, q_ref)
    print("KERNEL_OK")
</pallas_src>

<mosaic_0001>
module attributes {stable_mosaic.version = 11 : i64} {
  func.func @_qfunc_kernel(%arg0: i32, %arg1: memref<8x32xbf16, #tpu.memory_space<vmem>>, %arg2: memref<32x32xbf16, #tpu.memory_space<vmem>>, %arg3: memref<1x32xf32, #tpu.memory_space<vmem>>, %arg4: memref<32x32xbf16, #tpu.memory_space<vmem>>, %arg5: memref<1x32xf32, #tpu.memory_space<vmem>>, %arg6: memref<1x32xf32, #tpu.memory_space<vmem>>, %arg7: memref<1x1xf32, #tpu.memory_space<smem>>, %arg8: memref<8x1xf32, #tpu.memory_space<vmem>>) attributes {dimension_semantics = [#tpu.dimension_semantics<parallel>], iteration_bounds = array<i64: 1>, scalar_prefetch = 0 : i64, scratch_operands = 0 : i64, tpu.core_type = #tpu.core_type<tc>, window_params = [{transform_indices = @transform_0, window_bounds = array<i64: 8, 32>}, {pipeline_mode = #tpu.pipeline_mode<synchronous>, transform_indices = @transform_1, window_bounds = array<i64: 32, 32>}, {pipeline_mode = #tpu.pipeline_mode<synchronous>, transform_indices = @transform_2, window_bounds = array<i64: 1, 32>}, {pipeline_mode = #tpu.pipeline_mode<synchronous>, transform_indices = @transform_3, window_bounds = array<i64: 32, 32>}, {pipeline_mode = #tpu.pipeline_mode<synchronous>, transform_indices = @transform_4, window_bounds = array<i64: 1, 32>}, {pipeline_mode = #tpu.pipeline_mode<synchronous>, transform_indices = @transform_5, window_bounds = array<i64: 1, 32>}, {transform_indices = @transform_6, window_bounds = array<i64: 1, 1>}, {transform_indices = @transform_7, window_bounds = array<i64: 8, 1>}]} {
    %c0 = arith.constant 0 : index
    %c0_0 = arith.constant 0 : index
    %0 = vector.load %arg1[%c0, %c0_0] : memref<8x32xbf16, #tpu.memory_space<vmem>>, vector<8x32xbf16>
    %c0_1 = arith.constant 0 : index
    %c0_2 = arith.constant 0 : index
    %1 = vector.load %arg2[%c0_1, %c0_2] : memref<32x32xbf16, #tpu.memory_space<vmem>>, vector<32x32xbf16>
    %cst = arith.constant dense<0.000000e+00> : vector<8x32xf32>
    %2 = tpu.matmul %0, %1, %cst {dimension_numbers = #tpu.dot_dimension_numbers<[1], [0], [0], [1], [0, 0, 1, 1], [], []>} : vector<8x32xbf16>, vector<32x32xbf16>, vector<8x32xf32> -> vector<8x32xf32>
    %c0_3 = arith.constant 0 : index
    %c0_4 = arith.constant 0 : index
    %3 = vector.load %arg3[%c0_3, %c0_4] : memref<1x32xf32, #tpu.memory_space<vmem>>, vector<1x32xf32>
    %4 = vector.broadcast %3 : vector<1x32xf32> to vector<8x32xf32>
    %5 = arith.addf %2, %4 : vector<8x32xf32>
    %cst_5 = arith.constant 0.000000e+00 : f32
    %6 = vector.broadcast %cst_5 : f32 to vector<8x32xf32>
    %7 = arith.maximumf %5, %6 : vector<8x32xf32>
    %8 = arith.truncf %7 : vector<8x32xf32> to vector<8x32xbf16>
    %c0_6 = arith.constant 0 : index
    %c0_7 = arith.constant 0 : index
    %9 = vector.load %arg4[%c0_6, %c0_7] : memref<32x32xbf16, #tpu.memory_space<vmem>>, vector<32x32xbf16>
    %cst_8 = arith.constant dense<0.000000e+00> : vector<8x32xf32>
    %10 = tpu.matmul %8, %9, %cst_8 {dimension_numbers = #tpu.dot_dimension_numbers<[1], [0], [0], [1], [0, 0, 1, 1], [], []>} : vector<8x32xbf16>, vector<32x32xbf16>, vector<8x32xf32> -> vector<8x32xf32>
    %c0_9 = arith.constant 0 : index
    %c0_10 = arith.constant 0 : index
    %11 = vector.load %arg5[%c0_9, %c0_10] : memref<1x32xf32, #tpu.memory_space<vmem>>, vector<1x32xf32>
    %12 = vector.broadcast %11 : vector<1x32xf32> to vector<8x32xf32>
    %13 = arith.addf %10, %12 : vector<8x32xf32>
    %cst_11 = arith.constant 0.000000e+00 : f32
    %14 = vector.broadcast %cst_11 : f32 to vector<8x32xf32>
    %15 = arith.maximumf %13, %14 : vector<8x32xf32>
    %c0_12 = arith.constant 0 : index
    %c0_13 = arith.constant 0 : index
    %16 = vector.load %arg6[%c0_12, %c0_13] : memref<1x32xf32, #tpu.memory_space<vmem>>, vector<1x32xf32>
    %17 = vector.broadcast %16 : vector<1x32xf32> to vector<8x32xf32>
    %18 = arith.mulf %15, %17 : vector<8x32xf32>
    %cst_14 = arith.constant dense<0.000000e+00> : vector<8xf32>
    %19 = vector.multi_reduction <add>, %18, %cst_14 [1] : vector<8x32xf32> to vector<8xf32>
    %20 = vector.shape_cast %19 : vector<8xf32> to vector<8x1xf32>
    %c0_15 = arith.constant 0 : index
    %c0_16 = arith.constant 0 : index
    %21 = memref.load %arg7[%c0_15, %c0_16] : memref<1x1xf32, #tpu.memory_space<smem>>
    %22 = vector.broadcast %21 : f32 to vector<8x1xf32>
    %23 = arith.addf %20, %22 : vector<8x1xf32>
    %c0_17 = arith.constant 0 : index
    %c0_18 = arith.constant 0 : index
    %24 = vector.load %arg8[%c0_17, %c0_18] : memref<8x1xf32, #tpu.memory_space<vmem>>, vector<8x1xf32>
    tpu.vector_store %arg8[%c0_17, %c0_18], %23 {strides = array<i32>} : memref<8x1xf32, #tpu.memory_space<vmem>>, vector<8x1xf32>,
    return
  }
  func.func @transform_0(%arg0: i32) -> (i32, i32) {
    %c0_i32 = arith.constant 0 : i32
    %c0_i32_0 = arith.constant 0 : i32
    return %arg0, %c0_i32 : i32, i32
  }
  func.func @transform_1(%arg0: i32) -> (i32, i32) {
    %c0_i32 = arith.constant 0 : i32
    %c0_i32_0 = arith.constant 0 : i32
    %c0_i32_1 = arith.constant 0 : i32
    return %c0_i32, %c0_i32_0 : i32, i32
  }
  func.func @transform_2(%arg0: i32) -> (i32, i32) {
    %c0_i32 = arith.constant 0 : i32
    %c0_i32_0 = arith.constant 0 : i32
    %c0_i32_1 = arith.constant 0 : i32
    return %c0_i32, %c0_i32_0 : i32, i32
  }
  func.func @transform_3(%arg0: i32) -> (i32, i32) {
    %c0_i32 = arith.constant 0 : i32
    %c0_i32_0 = arith.constant 0 : i32
    %c0_i32_1 = arith.constant 0 : i32
    return %c0_i32, %c0_i32_0 : i32, i32
  }
  func.func @transform_4(%arg0: i32) -> (i32, i32) {
    %c0_i32 = arith.constant 0 : i32
    %c0_i32_0 = arith.constant 0 : i32
    %c0_i32_1 = arith.constant 0 : i32
    return %c0_i32, %c0_i32_0 : i32, i32
  }
  func.func @transform_5(%arg0: i32) -> (i32, i32) {
    %c0_i32 = arith.constant 0 : i32
    %c0_i32_0 = arith.constant 0 : i32
    %c0_i32_1 = arith.constant 0 : i32
    return %c0_i32, %c0_i32_0 : i32, i32
  }
  func.func @transform_6(%arg0: i32) -> (i32, i32) {
    %c0_i32 = arith.constant 0 : i32
    %c0_i32_0 = arith.constant 0 : i32
    %c0_i32_1 = arith.constant 0 : i32
    return %c0_i32, %c0_i32_0 : i32, i32
  }
  func.func @transform_7(%arg0: i32) -> (i32, i32) {
    %c0_i32 = arith.constant 0 : i32
    %c0_i32_0 = arith.constant 0 : i32
    return %arg0, %c0_i32 : i32, i32
  }
}

</mosaic_0001>

<bundles_post_ra>
// kernel: _lambda_.1
= control target key start
LH: loop header
LB: loop body
LE: loop exit
PB: predicated region body
PF: predicated region fallthrough
CT: control target
= control target key end

     0   :  { %v222_v0 = vmov 0.0   ;;  %vm223_vm0 = vmmov 0   ;;  %vm52_vm1 = vcmask 261120   ;;  %vm179_vm2 = vcmask 7168   ;;  %s297_s1 = inlined_call_operand.vmem [shape: bf16[32,32], index: 1, kind: input, shape index: {}]   ;;  %s298_s0 = inlined_call_operand.vmem [shape: bf16[8,32], index: 0, kind: input, shape index: {}]   ;;  %s299_s3 = inlined_call_operand.vmem [shape: bf16[32,32], index: 3, kind: input, shape index: {}]   ;;  %s300_s2 = inlined_call_operand.vmem [shape: f32[1,32], index: 2, kind: input, shape index: {}]   ;;  %s301_s4 = inlined_call_operand.vmem [shape: f32[1,32], index: 4, kind: input, shape index: {}]   ;;  %s302_s5 = inlined_call_operand.vmem [shape: f32[1,32], index: 5, kind: input, shape index: {}]   ;;  %s303_s6 = inlined_call_operand.<no memory space> [shape: f32[1,1], index: 6, kind: input, shape index: {}]   ;;  %s304_s7 = inlined_call_operand.vmem [shape: f32[8,1], index: 7, kind: output, shape index: {}]  }
   0x1   :  { %200 = vmatprep.subr.bf16.mxu0 %v222_v0  ;;  %v218_v1 = vld [vmem:[%s297_s1] sm:$0xff]   ;;  %204 = vmatprep.mubr.msk.bf16.mxu0 %vm223_vm0, %v222_v0  ;;  %v219_v2 = vld [vmem:[%s297_s1 + $0x8] sm:$0xff]   ;;  %v177_v24 = vstv %s303_s6 }
   0x2   :  { %208 = vmatprep.subr.bf16.mxu1 %v222_v0  ;;  %212 = vmatprep.mubr.msk.bf16.mxu1 %vm223_vm0, %v222_v0  ;;  %v28_v3 = vld [vmem:[%s298_s0] sm:$0xf]  ;;  %v221_v5 = vld [vmem:[%s299_s3 + $0x8] sm:$0xff]  }
   0x3   :  { %201 = vmatpush3.bf16.msra.mxu0 %v218_v1  ;;  %v220_v4 = vld [vmem:[%s299_s3] sm:$0xff]  }
   0x4   :  { %202 = vmatprep.subr.bf16.mxu0 %v222_v0  ;;  %209 = vmatpush3.bf16.msra.mxu1 %v220_v4  ;;  %v185_v6 = vld [vmem:[%s300_s2] ss:$0 sm:$0xff] }
   0x5   :  { %210 = vmatprep.subr.bf16.mxu1 %v222_v0  ;;  %v189_v14 = vld [vmem:[%s301_s4] ss:$0 sm:$0xff] }
   0x6   :  { %v193_v19 = vld [vmem:[%s302_s5] ss:$0 sm:$0xff] }
   0x7   :  { %203 = vmatpush3.bf16.msra.mxu0 %v219_v2 }
   0x8   :  { %211 = vmatpush3.bf16.msra.mxu1 %v221_v5 }
   0xa   :  { %205 = vmatmul.mubr.msk.bf16.vlgmr.msra.gmra.mrb[0].mxu0 %vm52_vm1, %v28_v3 }
  0xdd   :  { %v90_v7 = vpop.f32.mrb[0].mxu0 }
  0xde   :  { %v91_v8 = vadd.f32 %v185_v6, %v90_v7  ;;  %v206_v9 = vpop.f32.mrb[1].mxu0 }
  0xdf   :  { %v93_v10 = vpop.f32.mrb[2].mxu0 }
  0xe0   :  { %v96_v11 = vmax.f32 %v91_v8, 0.0  ;;  %v207_v12 = vpop.f32.mrb[3].mxu0 }
  0xe2   :  { %v97_v13 = vpack.c.bf16 %v96_v11, %v96_v11 }
  0xe4   :  { %213 = vmatmul.mubr.msk.bf16.vlgmr.msra.gmra.mrb[0].mxu1 %vm52_vm1, %v97_v13 }
 0x1b7   :  { %v158_v15 = vpop.f32.mrb[0].mxu1 }
 0x1b8   :  { %v159_v16 = vadd.f32 %v189_v14, %v158_v15  ;;  %v214_v17 = vpop.f32.mrb[1].mxu1 }
 0x1b9   :  { %v161_v18 = vpop.f32.mrb[2].mxu1 }
 0x1ba   :  { %v164_v20 = vmax.f32 %v159_v16, 0.0  ;;  %v215_v21 = vpop.f32.mrb[3].mxu1 }
 0x1bc   :  { %v172_v22 = vmul.f32 %v193_v19, %v164_v20 }
 0x1be   :  { %v173_v23 = vsel %vm52_vm1, %v172_v22, 0.0 }
 0x1bf   :  { %174 = vadd.xlane.f32.xlu0 %v173_v23 }
 0x24c   :  { %v175_v25 = vpop.xlane.xlu0 %174 }
 0x24d   :  { %v178_v26 = vadd.f32 %v177_v24, %v175_v25 }
 0x24f   :  { %180 = vst.msk [vmem:[%s304_s7] sm:$0xff] %vm179_vm2, %v178_v26 }

</bundles_post_ra>
